<compile_context>
chip_gen: v5e
topology: v5e:2x2
jax: 0.10.0
libtpu: 0.0.40
codegen_flags: <defaults>
</compile_context>

<pallas_src>
import math

import jax
import jax.numpy as jnp
from jax.experimental import pallas as pl
from jax.experimental.pallas import tpu as pltpu


def _round_up(n: int, m: int) -> int:
    return ((n + m - 1) // m) * m


def _cdiv(a: int, b: int) -> int:
    return (a + b - 1) // b


def _pe_kernel(div_ref, o_ref):
    # div_ref: (1, D)  div_term duplicated per sin/cos pair: [d0, d0, d1, d1, ...]
    # o_ref:   (TS, D) rows = positions of this grid tile, lanes = channels
    ts, dp = o_ref.shape
    i = pl.program_id(0)

    col = jax.lax.broadcasted_iota(jnp.int32, (1, dp), 1)
    is_odd = (col % 2) == 1                                    # odd lanes -> cos

    row = jax.lax.broadcasted_iota(jnp.int32, (ts, 1), 0)
    pos = (i * ts + row).astype(jnp.float32)                   # exact ints in f32

    angle = pos * div_ref[...]                                 # (TS, D)
    # Real sin AND cos on the full tile (bit-identical to the reference formula).
    # Costs 2 VPU polynomials/elem; kept for exactness over the recurrence trick.
    o_ref[...] = jnp.where(is_odd, jnp.cos(angle), jnp.sin(angle))


def _choose_tile(seq_len: int, d_model: int,
                 max_tile_seq: int = 512, vmem_tile_budget: int = 8 << 20):
    """Pick (tile_rows, num_tiles): VMEM-budgeted, even grid count for v7x."""
    row_bytes = max(d_model, 1) * 4
    cap = (vmem_tile_budget // (2 * row_bytes)) // 8 * 8       # double-buffered
    cap = max(8, min(max_tile_seq, cap))
    if seq_len <= cap:
        return seq_len, 1                                      # full-dim block is legal
    n = _cdiv(seq_len, cap)
    if n % 2:                                                  # even grid -> 2 TCs busy
        n += 1
    ts = _round_up(_cdiv(seq_len, n), 8)
    return ts, _cdiv(seq_len, ts)


def positional_embedding(x: jax.Array, d_model: int, *, max_tile_seq: int = 512) -> jax.Array:
    """Equivalent of PositionalEmbedding(d_model).forward(x) -> (1, seq_len, d_model) f32."""
    seq_len = x.shape[1]
    ts, num_tiles = _choose_tile(seq_len, d_model, max_tile_seq)

    # div_term computed EXACTLY like the reference / PyTorch buffer, then
    # duplicated per (sin, cos) lane pair -> (1, d_model).
    div_term = jnp.exp(
        jnp.arange(0, d_model, 2, dtype=jnp.float32) * (-math.log(10000.0) / d_model)
    )
    div_full = jnp.repeat(div_term, 2)[:d_model][None, :]

    pe = pl.pallas_call(
        _pe_kernel,
        out_shape=jax.ShapeDtypeStruct((1, seq_len, d_model), jnp.float32),
        grid=(num_tiles,),
        in_specs=[pl.BlockSpec((1, d_model), lambda i: (0, 0))],
        out_specs=pl.BlockSpec((None, ts, d_model), lambda i: (0, i, 0)),
        compiler_params=pltpu.CompilerParams(
            dimension_semantics=("parallel",),
        ),
    )(div_full)
    return pe


def _reference(seq_len: int, d_model: int) -> jnp.ndarray:
    # plain-JAX reference mirroring the PyTorch buffer
    position = jnp.arange(seq_len, dtype=jnp.float32)[:, None]
    div_term = jnp.exp(
        jnp.arange(0, d_model, 2, dtype=jnp.float32) * (-math.log(10000.0) / d_model)
    )
    pe = jnp.zeros((seq_len, d_model), dtype=jnp.float32)
    pe = pe.at[:, 0::2].set(jnp.sin(position * div_term))
    pe = pe.at[:, 1::2].set(jnp.cos(position * div_term))
    return pe[None]


if __name__ == "__main__":
    # Small shapes consistent with the module's forward.
    d_model = 32
    batch, seq_len = 2, 8
    key = jax.random.PRNGKey(0)
    x = jax.random.normal(key, (batch, seq_len, d_model), dtype=jnp.float32)

    out = jax.block_until_ready(positional_embedding(x, d_model))
    ref = _reference(seq_len, d_model)
    assert out.shape == (1, seq_len, d_model), out.shape
    assert jnp.allclose(out, ref, atol=1e-5, rtol=1e-5), "mismatch vs reference (small)"

    # Multi-tile shape: even grid count + a partial trailing seq block.
    d_model2, seq_len2 = 256, 1000
    x2 = jnp.zeros((1, seq_len2, d_model2), dtype=jnp.float32)
    out2 = jax.block_until_ready(positional_embedding(x2, d_model2))
    ref2 = _reference(seq_len2, d_model2)
    assert out2.shape == (1, seq_len2, d_model2), out2.shape
    assert jnp.allclose(out2, ref2, atol=1e-4, rtol=1e-5), "mismatch vs reference (multi-tile)"

    print("KERNEL_OK")
</pallas_src>

<mosaic_0001>
module attributes {stable_mosaic.version = 11 : i64} {
  func.func @_pe_kernel(%arg0: i32, %arg1: memref<1x32xf32, #tpu.memory_space<vmem>>, %arg2: memref<1x8x32xf32, #tpu.memory_space<vmem>>) attributes {dimension_semantics = [#tpu.dimension_semantics<parallel>], iteration_bounds = array<i64: 1>, scalar_prefetch = 0 : i64, scratch_operands = 0 : i64, tpu.core_type = #tpu.core_type<tc>, window_params = [{pipeline_mode = #tpu.pipeline_mode<synchronous>, transform_indices = @transform_0, window_bounds = array<i64: 1, 32>}, {transform_indices = @transform_1, window_bounds = array<i64: 1, 8, 32>}]} {
    %0 = tpu.iota {dimensions = array<i32: 1>} : vector<1x32xi32>
    %c2_i32 = arith.constant 2 : i32
    %c0_i32 = arith.constant 0 : i32
    %1 = arith.cmpi eq, %c2_i32, %c0_i32 : i32
    %c1_i32 = arith.constant 1 : i32
    %2 = arith.select %1, %c1_i32, %c2_i32 : i32
    %3 = vector.broadcast %2 : i32 to vector<1x32xi32>
    %4 = arith.remsi %0, %3 : vector<1x32xi32>
    %c0_i32_0 = arith.constant 0 : i32
    %5 = vector.broadcast %c0_i32_0 : i32 to vector<1x32xi32>
    %6 = arith.cmpi ne, %4, %5 : vector<1x32xi32>
    %c0_i32_1 = arith.constant 0 : i32
    %7 = vector.broadcast %c0_i32_1 : i32 to vector<1x32xi32>
    %8 = arith.cmpi slt, %4, %7 : vector<1x32xi32>
    %c0_i32_2 = arith.constant 0 : i32
    %9 = arith.cmpi slt, %2, %c0_i32_2 : i32
    %10 = vector.broadcast %9 : i1 to vector<1x32xi1>
    %11 = vector.broadcast %10 : vector<1x32xi1> to vector<1x32xi1>
    %12 = arith.xori %8, %11 : vector<1x32xi1>
    %13 = arith.andi %12, %6 : vector<1x32xi1>
    %14 = vector.broadcast %2 : i32 to vector<1x32xi32>
    %15 = arith.addi %4, %14 : vector<1x32xi32>
    %16 = arith.select %13, %15, %4 : vector<1x32xi1>, vector<1x32xi32>
    %c1_i32_3 = arith.constant 1 : i32
    %17 = vector.broadcast %c1_i32_3 : i32 to vector<1x32xi32>
    %18 = arith.cmpi eq, %16, %17 : vector<1x32xi32>
    %19 = tpu.iota {dimensions = array<i32: 0>} : vector<8x1xi32>
    %c8_i32 = arith.constant 8 : i32
    %20 = arith.muli %arg0, %c8_i32 : i32
    %21 = vector.broadcast %20 : i32 to vector<8x1xi32>
    %22 = arith.addi %21, %19 : vector<8x1xi32>
    %23 = arith.sitofp %22 : vector<8x1xi32> to vector<8x1xf32>
    %c0 = arith.constant 0 : index
    %c0_4 = arith.constant 0 : index
    %24 = vector.load %arg1[%c0, %c0_4] : memref<1x32xf32, #tpu.memory_space<vmem>>, vector<1x32xf32>
    %25 = vector.broadcast %23 : vector<8x1xf32> to vector<8x32xf32>
    %26 = vector.broadcast %24 : vector<1x32xf32> to vector<8x32xf32>
    %27 = arith.mulf %25, %26 : vector<8x32xf32>
    %28 = math.cos %27 : vector<8x32xf32>
    %29 = math.sin %27 : vector<8x32xf32>
    %30 = vector.shape_cast %18 : vector<1x32xi1> to vector<1x32xi1>
    %31 = vector.broadcast %30 : vector<1x32xi1> to vector<8x32xi1>
    %32 = arith.select %31, %28, %29 : vector<8x32xi1>, vector<8x32xf32>
    %c0_5 = arith.constant 0 : index
    %c0_6 = arith.constant 0 : index
    %c0_7 = arith.constant 0 : index
    %33 = vector.load %arg2[%c0_5, %c0_6, %c0_7] : memref<1x8x32xf32, #tpu.memory_space<vmem>>, vector<1x8x32xf32>
    %34 = vector.shape_cast %33 : vector<1x8x32xf32> to vector<8x32xf32>
    %35 = vector.shape_cast %32 : vector<8x32xf32> to vector<1x8x32xf32>
    tpu.vector_store %arg2[%c0_5, %c0_6, %c0_7], %35 {strides = array<i32>} : memref<1x8x32xf32, #tpu.memory_space<vmem>>, vector<1x8x32xf32>,
    return
  }
  func.func @transform_0(%arg0: i32) -> (i32, i32) {
    %c0_i32 = arith.constant 0 : i32
    %c0_i32_0 = arith.constant 0 : i32
    %c0_i32_1 = arith.constant 0 : i32
    return %c0_i32, %c0_i32_0 : i32, i32
  }
  func.func @transform_1(%arg0: i32) -> (i32, i32, i32) {
    %c0_i32 = arith.constant 0 : i32
    %c0_i32_0 = arith.constant 0 : i32
    %c0_i32_1 = arith.constant 0 : i32
    return %c0_i32, %arg0, %c0_i32_0 : i32, i32, i32
  }
}

</mosaic_0001>

<bundles_post_ra>
// kernel: tpu_custom_call.1
= control target key start
LH: loop header
LB: loop body
LE: loop exit
PB: predicated region body
PF: predicated region fallthrough
CT: control target
= control target key end

     0   :  { %6 = vsyncpa [#allocation3], 0  ;;  %s521_s0 = inlined_call_operand.hbm [shape: f32[1,32], index: 0, kind: input, shape index: {}]   ;;  %s522_s1 = inlined_call_operand.hbm [shape: f32[1,8,32], index: 1, kind: output, shape index: {}]  }
   0x1   :  { %7 = vsyncpa [#allocation4], 0  ;;  %s13_s8 = sshll.u32 %s521_s0, 4  ;;  %s448_s9 = smov [#allocation2]   ;;  %s14_s8 = int_to_ptr.hbm [resolvable:$true] %s13_s8 }
   0x2   :  { %s15_s10 = sshll.u32 %s448_s9, 4  ;;  %s16_s10 = int_to_ptr.vmem [resolvable:$true] %s15_s10 }
   0x3   :  { %18 = dma.hbm_to_vmem [thread:$0]  %s14_s8, 16, %s16_s10, [#allocation3]  }
   0x4   :  { %444 = dma.done.wait [#allocation3], 16  }
   0x5   :  { %445 = vsyncadd [#allocation3], 4294967280  ;;  %v23_v0 = vlaneseq  ;;  %v395_v3 = vld [vmem:[#allocation2] ss:$0 sm:$0xff]  ;;  %v449_v16 = vmov 683565275  }
   0x6   :  { %v450_v18 = vmov 2475754826   ;;  %v451_v20 = vmov 2131351028   ;;  %v452_v22 = vmov 2102212464  }
   0x7   :  { %v39_v1 = vshrl.u32 %v23_v0, 7  ;;  %v453_v24 = vmov 920167782   ;;  %v454_v30 = vmov 1326507024   ;;  %s456_s0 = smov [#allocation5]  }
   0x8   :  { %s368_s11 = sshll.u32 %s456_s0, 4  ;;  %s370_s14 = sshll.u32 %s522_s1, 4  ;;  %s369_s11 = int_to_ptr.vmem [resolvable:$true] %s368_s11  ;;  %s371_s14 = int_to_ptr.hbm [resolvable:$true] %s370_s14 }
   0x9   :  { %v43_v2 = vcvt.s32.f32 %v39_v1 }
   0xb   :  { %v471_v4 = vmul.f32 %v395_v3, %v43_v2 }
   0xd   :  { %v52_v5 = vand.u32 2139095040, %v471_v4  ;;  %v49_v7 = vand.u32 2147483647, %v471_v4  ;;  %vm51_vm12 = vcmp.lt.s32.totalorder %v471_v4, 0 }
   0xf   :  { %v53_v6 = vshrl.u32 %v52_v5, 23  ;;  %v56_v10 = vand.u32 8388607, %v49_v7  ;;  %vm50_vm13 = vcmp.le.f32.partialorder %v49_v7, 0.7853982  ;;  %v24_v7 = vand.u32 127, %v23_v0 }
  0x11   :  { %v380_v8 = vadd.s32 4294967169, %v53_v6  ;;  %v57_v13 = vor.u32 8388608, %v56_v10  ;;  %v455_v6 = vmov 0  }
  0x13   :  { %v59_v9 = vadd.s32 1, %v380_v8  ;;  %v480_v32 = vshll.u32 %v57_v13, 8 }
  0x15   :  { %vm60_vm0 = vcmp.gt.s32.totalorder %v59_v9, 0  ;;  %v98_v44 = vand.u32 65535, %v480_v32  ;;  %v99_v45 = vshrl.u32 %v480_v32, 16 }
  0x16   :  { %v61_v11 = vsel %vm60_vm0, %v59_v9, 0 }
  0x17   :  { %v63_v12 = vand.u32 31, %v61_v11  ;;  %v477_v14 = vshrl.u32 %v61_v11, 5 }
  0x19   :  { %v64_v15 = vsub.s32 32, %v63_v12  ;;  %v66_v17 = vshll.u32 %v449_v16, %v63_v12  ;;  %v69_v19 = vshll.u32 %v450_v18, %v63_v12  ;;  %v72_v21 = vshll.u32 %v451_v20, %v63_v12 }
  0x1a   :  { %v75_v23 = vshll.u32 %v452_v22, %v63_v12  ;;  %v78_v25 = vshll.u32 %v453_v24, %v63_v12  ;;  %vm81_vm1 = vcmp.lt.s32.totalorder %v477_v14, 1  ;;  %vm84_vm2 = vcmp.lt.s32.totalorder %v477_v14, 4 }
  0x1b   :  { %v67_v26 = vshrl.u32 %v450_v18, %v64_v15  ;;  %v70_v27 = vshrl.u32 %v451_v20, %v64_v15  ;;  %v73_v28 = vshrl.u32 %v452_v22, %v64_v15  ;;  %v76_v29 = vshrl.u32 %v453_v24, %v64_v15 }
  0x1c   :  { %v79_v31 = vshrl.u32 %v454_v30, %v64_v15  ;;  %vm83_vm3 = vcmp.lt.s32.totalorder %v477_v14, 3  ;;  %vm82_vm4 = vcmp.lt.s32.totalorder %v477_v14, 2  ;;  %v65_v52 = vshrl.u32 %v449_v16, %v64_v15 }
  0x1d   :  { %v68_v33 = vor.u32 %v67_v26, %v66_v17  ;;  %v71_v34 = vor.u32 %v70_v27, %v69_v19  ;;  %v74_v35 = vor.u32 %v73_v28, %v72_v21  ;;  %v77_v36 = vor.u32 %v76_v29, %v75_v23 }
  0x1e   :  { %v80_v37 = vor.u32 %v79_v31, %v78_v25 }
  0x1f   :  { %v89_v38 = vsel %vm81_vm1, %v68_v33, %v71_v34  ;;  %v93_v39 = vsel %vm81_vm1, %v71_v34, %v74_v35  ;;  %v90_v40 = vsel %vm84_vm2, %v77_v36, 920167782  ;;  %v85_v2 = vsel %vm81_vm1, %v65_v52, %v68_v33 }
  0x20   :  { %v94_v41 = vsel %vm84_vm2, %v80_v37, 1326507024  ;;  %v91_v42 = vsel %vm83_vm3, %v74_v35, %v90_v40  ;;  %v86_v5 = vsel %vm84_vm2, %v74_v35, 2102212464 }
  0x21   :  { %v95_v43 = vsel %vm83_vm3, %v77_v36, %v94_v41  ;;  %v92_v46 = vsel %vm82_vm4, %v89_v38, %v91_v42  ;;  %v87_v17 = vsel %vm83_vm3, %v71_v34, %v86_v5 }
  0x22   :  { %v96_v47 = vsel %vm82_vm4, %v93_v39, %v95_v43  ;;  %v122_v50 = vand.u32 65535, %v92_v46  ;;  %v123_v51 = vshrl.u32 %v92_v46, 16  ;;  %v88_v25 = vsel %vm82_vm4, %v85_v2, %v87_v17 }
  0x23   :  { %v100_v48 = vand.u32 65535, %v96_v47  ;;  %v101_v49 = vshrl.u32 %v96_v47, 16  ;;  %v142_v29 = vmul.u32 %v480_v32, %v88_v25  ;;  %vm192_vm4 = vweird.f32 %v471_v4 }
  0x24   :  { %v124_v56 = vmul.u32 %v122_v50, %v98_v44  ;;  %v125_v57 = vmul.u32 %v123_v51, %v98_v44  ;;  %v126_v58 = vmul.u32 %v122_v50, %v99_v45  ;;  %v127_v62 = vmul.u32 %v123_v51, %v99_v45 }
  0x25   :  { %v102_v53 = vmul.u32 %v100_v48, %v98_v44  ;;  %v103_v54 = vmul.u32 %v101_v49, %v98_v44  ;;  %v104_v55 = vmul.u32 %v100_v48, %v99_v45  ;;  %v105_v59 = vmul.u32 %v101_v49, %v99_v45 }
  0x26   :  { %v128_v63 = vshll.u32 %v125_v57, 16  ;;  %v130_v1 = vshll.u32 %v126_v58, 16  ;;  %v129_v15 = vshrl.u32 %v125_v57, 16  ;;  %v131_v21 = vshrl.u32 %v126_v58, 16 }
  0x27   :  { %v106_v60 = vshll.u32 %v103_v54, 16  ;;  %v108_v61 = vshll.u32 %v104_v55, 16  ;;  %v107_v10 = vshrl.u32 %v103_v54, 16  ;;  %v109_v18 = vshrl.u32 %v104_v55, 16 }
  0x28   :  { %vm132_vm6 = vc.u32 %v124_v56, %v128_v63  ;;  %v134_v9 = vadd.s32 %v128_v63, %v124_v56 }
  0x29   :  { %vm110_vm5 = vc.u32 %v102_v53, %v106_v60  ;;  %v112_v3 = vadd.s32 %v106_v60, %v102_v53  ;;  %v133_v12 = vsel %vm132_vm6, 1, %v455_v6  ;;  %vm361_vm6 = vcmask 261120  }
  0x2a   :  { %v111_v8 = vsel %vm110_vm5, 1, %v455_v6  ;;  %v135_v16 = vadd.s32 %v133_v12, %v127_v62  ;;  %vm136_vm8 = vc.u32 %v134_v9, %v130_v1  ;;  %v138_v24 = vadd.s32 %v134_v9, %v130_v1 }
  0x2b   :  { %v113_v11 = vadd.s32 %v111_v8, %v105_v59  ;;  %vm114_vm7 = vc.u32 %v112_v3, %v108_v61  ;;  %v137_v20 = vsel %vm136_vm8, 1, %v455_v6 }
  0x2c   :  { %v115_v13 = vsel %vm114_vm7, 1, %v455_v6  ;;  %v139_v22 = vadd.s32 %v137_v20, %v135_v16 }
  0x2d   :  { %v117_v19 = vadd.s32 %v115_v13, %v113_v11 }
  0x2e   :  { %v140_v26 = vadd.s32 %v139_v22, %v129_v15  ;;  %v29_v15 = vand.u32 1, %v24_v7 }
  0x2f   :  { %v118_v23 = vadd.s32 %v117_v19, %v107_v10 }
  0x30   :  { %v141_v28 = vadd.s32 %v140_v26, %v131_v21  ;;  %vm37_vm5 = vcmp.eq.s32.totalorder %v29_v15, 1 }
  0x31   :  { %v119_v27 = vadd.s32 %v118_v23, %v109_v18 }
  0x32   :  { %v145_v30 = vadd.s32 1, %v141_v28 }
  0x33   :  { %vm144_vm9 = vc.u32 %v119_v27, %v138_v24  ;;  %v143_v14 = vadd.s32 %v138_v24, %v119_v27 }
  0x34   :  { %v146_v31 = vsel %vm144_vm9, %v145_v30, %v141_v28 }
  0x35   :  { %v147_v33 = vadd.s32 %v146_v31, %v142_v29 }
  0x37   :  { %v148_v34 = vadd.s32 536870912, %v147_v33 }
  0x39   :  { %v149_v35 = vshrl.u32 %v148_v34, 30 }
  0x3b   :  { %v150_v36 = vshll.u32 %v149_v35, 30  ;;  %v173_v53 = vsub.s32 4, %v149_v35 }
  0x3d   :  { %v151_v37 = vsub.s32 %v147_v33, %v150_v36  ;;  %v174_v56 = vsel %vm51_vm12, %v173_v53, %v149_v35 }
  0x3e   :  { %v176_v59 = vsel %vm50_vm13, 0, %v174_v56 }
  0x3f   :  { %vm152_vm10 = vcmp.lt.s32.totalorder %v151_v37, 0  ;;  %v153_v38 = vsub.s32 0, %v151_v37  ;;  %v347_v1 = vadd.s32 3, %v176_v59  ;;  %v193_v8 = vand.u32 3, %v176_v59 }
  0x41   :  { %v154_v39 = vsel %vm152_vm10, %v153_v38, %v151_v37  ;;  %v348_v9 = vand.u32 3, %v347_v1  ;;  %vm198_vm14 = vcmp.eq.s32.totalorder %v193_v8, 2  ;;  %vm194_vm0 = vcmp.lt.s32.totalorder %v193_v8, 2 }
  0x42   :  { %v155_v40 = vclz %v154_v39  ;;  %vm195_vm1 = vcmp.eq.s32.totalorder %v193_v8, 0 }
  0x43   :  { %vm353_vm15 = vcmp.eq.s32.totalorder %v348_v9, 2  ;;  %vm350_vm2 = vcmp.eq.s32.totalorder %v348_v9, 0  ;;  %vm349_vm3 = vcmp.lt.s32.totalorder %v348_v9, 2 }
  0x44   :  { %v381_v41 = vadd.s32 4294967294, %v155_v40 }
  0x46   :  { %vm382_vm11 = vcmp.lt.s32.totalorder %v381_v41, 0 }
  0x47   :  { %v158_v42 = vsel %vm382_vm11, 0, %v381_v41 }
  0x48   :  { %v159_v43 = vsub.s32 32, %v158_v42  ;;  %v160_v44 = vshll.u32 %v151_v37, %v158_v42  ;;  %v163_v45 = vsub.s32 4294967266, %v158_v42 }
  0x4a   :  { %v161_v32 = vshrl.u32 %v143_v14, %v159_v43  ;;  %v164_v46 = vadd.s32 127, %v163_v45 }
  0x4c   :  { %v162_v47 = vor.u32 %v161_v32, %v160_v44  ;;  %v165_v48 = vshll.u32 %v164_v46, 23 }
  0x4e   :  { %v166_v49 = vor.u32 4788187, %v165_v48  ;;  %v169_v50 = vcvt.s32.f32 %v162_v47 }
  0x50   :  { %v167_v51 = vand.u32 2147483647, %v166_v49 }
  0x52   :  { %v170_v52 = vmul.f32 %v169_v50, %v167_v51 }
  0x54   :  { %v171_v54 = vxor.u32 2147483648, %v170_v52 }
  0x56   :  { %v172_v55 = vsel %vm51_vm12, %v171_v54, %v170_v52 }
  0x57   :  { %v175_v57 = vsel %vm50_vm13, %v471_v4, %v172_v55 }
  0x58   :  { %v177_v58 = vmul.f32 %v175_v57, %v175_v57 }
  0x5a   :  { %v178_v60 = vmul.f32 -0.001358992, %v177_v58  ;;  %v185_v61 = vmul.f32 -0.00019511016, %v177_v58 }
  0x5c   :  { %v179_v62 = vadd.f32 0.041655596, %v178_v60  ;;  %v186_v63 = vadd.f32 0.008332121, %v185_v61 }
  0x5e   :  { %v180_v2 = vmul.f32 %v179_v62, %v177_v58  ;;  %v187_v3 = vmul.f32 %v186_v63, %v177_v58 }
  0x60   :  { %v181_v5 = vadd.f32 -0.4999988, %v180_v2  ;;  %v188_v6 = vadd.f32 -0.16666654, %v187_v3 }
  0x62   :  { %v182_v10 = vmul.f32 %v181_v5, %v177_v58  ;;  %v189_v11 = vmul.f32 %v188_v6, %v177_v58 }
  0x64   :  { %v183_v12 = vadd.f32 1.0, %v182_v10  ;;  %v190_v13 = vadd.f32 1.0, %v189_v11 }
  0x66   :  { %v191_v16 = vmul.f32 %v190_v13, %v175_v57  ;;  %v199_v17 = vxor.u32 2147483648, %v183_v12 }
  0x68   :  { %v196_v18 = vxor.u32 2147483648, %v191_v16  ;;  %v200_v19 = vsel %vm198_vm14, %v199_v17, %v191_v16  ;;  %v355_v20 = vsel %vm353_vm15, %v199_v17, %v191_v16 }
  0x6a   :  { %v197_v0 = vsel %vm195_vm1, %v183_v12, %v196_v18  ;;  %v352_v21 = vsel %vm350_vm2, %v183_v12, %v196_v18 }
  0x6b   :  { %v201_v22 = vsel %vm194_vm0, %v197_v0, %v200_v19  ;;  %v356_v23 = vsel %vm349_vm3, %v352_v21, %v355_v20 }
  0x6c   :  { %v202_v24 = vsel %vm192_vm4, nan, %v201_v22  ;;  %v357_v25 = vsel %vm192_vm4, nan, %v356_v23 }
  0x6d   :  { %v360_v26 = vsel %vm37_vm5, %v202_v24, %v357_v25 }
  0x6e   :  { %362 = vst.msk [vmem:[#allocation5] sm:$0xff] %vm361_vm6, %v360_v26 }
  0x6f   :  { %373 = dma.vmem_to_hbm [thread:$0]  %s369_s11, 128, %s371_s14, [#allocation4]  }
  0x70   :  { %446 = dma.done.wait [#allocation4], 128  }
  0x71   :  { %447 = vsyncadd [#allocation4], 4294967168 }
  0x72   :  { %378 = vsyncpa [#allocation3], 1 }
  0x73   :  { %379 = vsyncpa [#allocation4], 1 }

</bundles_post_ra>
